<compile_context>
chip_gen: v6e
topology: v6e:2x2x1
jax: 0.10.0
libtpu: 0.0.40
codegen_flags: <defaults>
</compile_context>

<pallas_src>
import functools

import jax
import jax.numpy as jnp
import numpy as np
from jax.experimental import pallas as pl
from jax.experimental.pallas import tpu as pltpu

EPS = 1e-5


def _h_swish(z):
    # h_swish(z) = z * relu6(z + 3) / 6
    return z * (jnp.clip(z + 3.0, 0.0, 6.0) * (1.0 / 6.0))


# ---------------- fused Pallas kernel ----------------

def _coordatt_kernel(x_ref, ehT_ref, ewT_ref, eh_ref, ew_ref,
                     w1_ref, b1_ref, w2_ref, b2_ref, w3_ref, b3_ref,
                     o_ref, z_ref, ah_ref, aw_ref, *, B, C, H, W):
    HW = H * W
    P = H + W

    x = x_ref[...]                                            # (B*C, H*W) lane-dense

    # ---- coordinate pooling via one-hot contractions (no in-kernel reshapes) ----
    # ph[r, i] = mean_j x[r, i*W + j]   ;   pw[r, j] = mean_i x[r, i*W + j]
    ph = jnp.dot(x, ehT_ref[...], preferred_element_type=jnp.float32) * (1.0 / W)  # (B*C, H)
    pw = jnp.dot(x, ewT_ref[...], preferred_element_type=jnp.float32) * (1.0 / H)  # (B*C, W)

    w1 = w1_ref[...]                                          # (mip, C)

    # ---- shared 1x1 conv (conv1) applied column-wise; assemble (mip, B*(H+W)) ----
    for b in range(B):
        ph_b = ph[b * C:(b + 1) * C, :]                       # (C, H)
        pw_b = pw[b * C:(b + 1) * C, :]                       # (C, W)
        z_ref[:, b * P:b * P + H] = jnp.dot(w1, ph_b, preferred_element_type=jnp.float32)
        z_ref[:, b * P + H:(b + 1) * P] = jnp.dot(w1, pw_b, preferred_element_type=jnp.float32)

    z = z_ref[...] + b1_ref[...]                              # conv1 bias, (mip, B*(H+W))

    # ---- BatchNorm2d(mip): training-mode batch stats, gamma=1, beta=0 ----
    mu = jnp.mean(z, axis=1, keepdims=True)
    var = jnp.mean((z - mu) ** 2, axis=1, keepdims=True)
    z = (z - mu) * jax.lax.rsqrt(var + EPS)

    # ---- h_swish ----
    z = _h_swish(z)

    # ---- per-axis gates: conv2 / conv3 (1x1, mip->C) + sigmoid ----
    w2 = w2_ref[...]; b2 = b2_ref[...]
    w3 = w3_ref[...]; b3 = b3_ref[...]
    for b in range(B):
        zh_b = z[:, b * P:b * P + H]                          # (mip, H)
        zw_b = z[:, b * P + H:(b + 1) * P]                    # (mip, W)
        ah_ref[b * C:(b + 1) * C, :] = jax.nn.sigmoid(
            jnp.dot(w2, zh_b, preferred_element_type=jnp.float32) + b2)   # (C, H)
        aw_ref[b * C:(b + 1) * C, :] = jax.nn.sigmoid(
            jnp.dot(w3, zw_b, preferred_element_type=jnp.float32) + b3)   # (C, W)

    # ---- broadcast gates to (B*C, H*W) via one-hot matmuls; gate + lane-dense store ----
    gate_h = jnp.dot(ah_ref[...], eh_ref[...], preferred_element_type=jnp.float32)  # (B*C, HW)
    gate_w = jnp.dot(aw_ref[...], ew_ref[...], preferred_element_type=jnp.float32)  # (B*C, HW)
    o_ref[...] = x * gate_h * gate_w


# ---------------- wrapper ----------------

def coordatt_forward(x_nchw, params):
    B, C, H, W = map(int, x_nchw.shape)
    mip = int(params["w1"].shape[0])
    oup = int(params["w2"].shape[0])
    assert oup == C, "CoordAtt gating requires oup == inp"
    HW, P = H * W, H + W

    # NCHW -> (B*C, H*W): contiguous reshape, pure layout plumbing (no transpose).
    x_flat = x_nchw.astype(jnp.float32).reshape(B * C, HW)

    # Constant one-hot expansion matrices (built once, tiny):
    #   eh[i, p] = 1 iff p // W == i   (row membership)
    #   ew[j, p] = 1 iff p %  W == j   (column membership)
    p_idx = np.arange(HW)
    eh_np = (p_idx[None, :] // W == np.arange(H)[:, None]).astype(np.float32)   # (H, HW)
    ew_np = (p_idx[None, :] % W == np.arange(W)[:, None]).astype(np.float32)    # (W, HW)
    eh = jnp.asarray(eh_np)
    ew = jnp.asarray(ew_np)
    ehT = jnp.asarray(np.ascontiguousarray(eh_np.T))                            # (HW, H)
    ewT = jnp.asarray(np.ascontiguousarray(ew_np.T))                            # (HW, W)

    kernel = functools.partial(_coordatt_kernel, B=B, C=C, H=H, W=W)
    vmem = lambda: pl.BlockSpec(memory_space=pltpu.MemorySpace.VMEM)

    out_flat = pl.pallas_call(
        kernel,
        out_shape=jax.ShapeDtypeStruct((B * C, HW), jnp.float32),
        in_specs=[vmem() for _ in range(11)],
        out_specs=vmem(),
        scratch_shapes=[
            pltpu.VMEM((mip, B * P), jnp.float32),   # conv1 output (pre-BN)
            pltpu.VMEM((B * C, H), jnp.float32),     # sigmoid gate along H
            pltpu.VMEM((B * C, W), jnp.float32),     # sigmoid gate along W
        ],
        compiler_params=pltpu.CompilerParams(vmem_limit_bytes=32 * 1024 * 1024),
    )(x_flat, ehT, ewT, eh, ew,
      params["w1"], params["b1"], params["w2"], params["b2"],
      params["w3"], params["b3"])

    return out_flat.reshape(B, C, H, W)


# ---------------- pure-JAX reference (mirrors the PyTorch module) ----------------

def reference_forward(x, params):
    B, C, H, W = x.shape
    xh = jnp.mean(x, axis=3, keepdims=True)                       # (B,C,H,1)  pool over W
    xw = jnp.mean(x, axis=2, keepdims=True)                       # (B,C,1,W)  pool over H
    xw = jnp.transpose(xw, (0, 1, 3, 2))                          # (B,C,W,1)
    y = jnp.concatenate([xh, xw], axis=2)                         # (B,C,H+W,1)
    y = jnp.einsum("mc,bcpq->bmpq", params["w1"], y) + params["b1"].reshape(1, -1, 1, 1)
    mu = jnp.mean(y, axis=(0, 2, 3), keepdims=True)               # BN, training-mode stats
    var = jnp.mean((y - mu) ** 2, axis=(0, 2, 3), keepdims=True)
    y = (y - mu) * jax.lax.rsqrt(var + EPS)
    y = y * (jnp.clip(y + 3.0, 0.0, 6.0) / 6.0)                   # h_swish
    yh, yw = y[:, :, :H, :], y[:, :, H:, :]
    yw = jnp.transpose(yw, (0, 1, 3, 2))                          # (B,mip,1,W)
    ah = jax.nn.sigmoid(jnp.einsum("om,bmpq->bopq", params["w2"], yh)
                        + params["b2"].reshape(1, -1, 1, 1))      # (B,C,H,1)
    aw = jax.nn.sigmoid(jnp.einsum("om,bmpq->bopq", params["w3"], yw)
                        + params["b3"].reshape(1, -1, 1, 1))      # (B,C,1,W)
    return x * aw * ah


# ---------------- main ----------------

if __name__ == "__main__":
    key = jax.random.PRNGKey(0)
    B, C, H, W = 2, 4, 16, 16
    groups = 32
    mip = max(8, C // groups)      # 8
    oup = C                        # identity-gated output requires oup == inp

    ks = jax.random.split(key, 7)
    params = {
        "w1": jax.random.normal(ks[0], (mip, C), jnp.float32) * 0.3,    # conv1 weight (mip, inp)
        "b1": jax.random.normal(ks[1], (mip, 1), jnp.float32) * 0.1,    # conv1 bias
        "w2": jax.random.normal(ks[2], (oup, mip), jnp.float32) * 0.3,  # conv2 weight
        "b2": jax.random.normal(ks[3], (oup, 1), jnp.float32) * 0.1,    # conv2 bias
        "w3": jax.random.normal(ks[4], (oup, mip), jnp.float32) * 0.3,  # conv3 weight
        "b3": jax.random.normal(ks[5], (oup, 1), jnp.float32) * 0.1,    # conv3 bias
    }
    x = jax.random.normal(ks[6], (B, C, H, W), jnp.float32)

    out = jax.block_until_ready(coordatt_forward(x, params))
    ref = jax.block_until_ready(reference_forward(x, params))

    assert out.shape == (B, C, H, W)
    np.testing.assert_allclose(np.asarray(out), np.asarray(ref), atol=1e-4, rtol=1e-4)
    print("KERNEL_OK")
</pallas_src>

<mosaic_0001>
module attributes {stable_mosaic.version = 11 : i64} {
  func.func @_coordatt_kernel(%arg0: memref<8x256xf32, #tpu.memory_space<vmem>>, %arg1: memref<256x16xf32, #tpu.memory_space<vmem>>, %arg2: memref<256x16xf32, #tpu.memory_space<vmem>>, %arg3: memref<16x256xf32, #tpu.memory_space<vmem>>, %arg4: memref<16x256xf32, #tpu.memory_space<vmem>>, %arg5: memref<8x4xf32, #tpu.memory_space<vmem>>, %arg6: memref<8x1xf32, #tpu.memory_space<vmem>>, %arg7: memref<4x8xf32, #tpu.memory_space<vmem>>, %arg8: memref<4x1xf32, #tpu.memory_space<vmem>>, %arg9: memref<4x8xf32, #tpu.memory_space<vmem>>, %arg10: memref<4x1xf32, #tpu.memory_space<vmem>>, %arg11: memref<8x256xf32, #tpu.memory_space<vmem>>, %arg12: memref<8x64xf32, #tpu.memory_space<vmem>>, %arg13: memref<8x16xf32, #tpu.memory_space<vmem>>, %arg14: memref<8x16xf32, #tpu.memory_space<vmem>>) attributes {dimension_semantics = [], scalar_prefetch = 0 : i64, scratch_operands = 3 : i64, tpu.core_type = #tpu.core_type<tc>} {
    %c0 = arith.constant 0 : index
    %c0_0 = arith.constant 0 : index
    %0 = vector.load %arg0[%c0, %c0_0] : memref<8x256xf32, #tpu.memory_space<vmem>>, vector<8x256xf32>
    %c0_1 = arith.constant 0 : index
    %c0_2 = arith.constant 0 : index
    %1 = vector.load %arg1[%c0_1, %c0_2] : memref<256x16xf32, #tpu.memory_space<vmem>>, vector<256x16xf32>
    %cst = arith.constant dense<0.000000e+00> : vector<8x16xf32>
    %2 = tpu.matmul %0, %1, %cst {dimension_numbers = #tpu.dot_dimension_numbers<[1], [0], [0], [1], [0, 0, 1, 1], [], []>} : vector<8x256xf32>, vector<256x16xf32>, vector<8x16xf32> -> vector<8x16xf32>
    %cst_3 = arith.constant 6.250000e-02 : f32
    %3 = vector.broadcast %cst_3 : f32 to vector<8x16xf32>
    %4 = arith.mulf %2, %3 : vector<8x16xf32>
    %c0_4 = arith.constant 0 : index
    %c0_5 = arith.constant 0 : index
    %5 = vector.load %arg2[%c0_4, %c0_5] : memref<256x16xf32, #tpu.memory_space<vmem>>, vector<256x16xf32>
    %cst_6 = arith.constant dense<0.000000e+00> : vector<8x16xf32>
    %6 = tpu.matmul %0, %5, %cst_6 {dimension_numbers = #tpu.dot_dimension_numbers<[1], [0], [0], [1], [0, 0, 1, 1], [], []>} : vector<8x256xf32>, vector<256x16xf32>, vector<8x16xf32> -> vector<8x16xf32>
    %cst_7 = arith.constant 6.250000e-02 : f32
    %7 = vector.broadcast %cst_7 : f32 to vector<8x16xf32>
    %8 = arith.mulf %6, %7 : vector<8x16xf32>
    %c0_8 = arith.constant 0 : index
    %c0_9 = arith.constant 0 : index
    %9 = vector.load %arg5[%c0_8, %c0_9] : memref<8x4xf32, #tpu.memory_space<vmem>>, vector<8x4xf32>
    %10 = vector.extract_strided_slice %4 {offsets = [0, 0], sizes = [4, 16], strides = [1, 1]} : vector<8x16xf32> to vector<4x16xf32>
    %11 = vector.extract_strided_slice %8 {offsets = [0, 0], sizes = [4, 16], strides = [1, 1]} : vector<8x16xf32> to vector<4x16xf32>
    %cst_10 = arith.constant dense<0.000000e+00> : vector<8x16xf32>
    %12 = tpu.matmul %9, %10, %cst_10 {dimension_numbers = #tpu.dot_dimension_numbers<[1], [0], [0], [1], [0, 0, 1, 1], [], []>} : vector<8x4xf32>, vector<4x16xf32>, vector<8x16xf32> -> vector<8x16xf32>
    %c0_11 = arith.constant 0 : index
    %c0_12 = arith.constant 0 : index
    %13 = vector.load %arg12[%c0_11, %c0_12] : memref<8x64xf32, #tpu.memory_space<vmem>>, vector<8x16xf32>
    tpu.vector_store %arg12[%c0_11, %c0_12], %12 {strides = array<i32>} : memref<8x64xf32, #tpu.memory_space<vmem>>, vector<8x16xf32>,
    %cst_13 = arith.constant dense<0.000000e+00> : vector<8x16xf32>
    %14 = tpu.matmul %9, %11, %cst_13 {dimension_numbers = #tpu.dot_dimension_numbers<[1], [0], [0], [1], [0, 0, 1, 1], [], []>} : vector<8x4xf32>, vector<4x16xf32>, vector<8x16xf32> -> vector<8x16xf32>
    %c0_14 = arith.constant 0 : index
    %c16 = arith.constant 16 : index
    %15 = vector.load %arg12[%c0_14, %c16] : memref<8x64xf32, #tpu.memory_space<vmem>>, vector<8x16xf32>
    tpu.vector_store %arg12[%c0_14, %c16], %14 {strides = array<i32>} : memref<8x64xf32, #tpu.memory_space<vmem>>, vector<8x16xf32>,
    %16 = vector.extract_strided_slice %4 {offsets = [4, 0], sizes = [4, 16], strides = [1, 1]} : vector<8x16xf32> to vector<4x16xf32>
    %17 = vector.extract_strided_slice %8 {offsets = [4, 0], sizes = [4, 16], strides = [1, 1]} : vector<8x16xf32> to vector<4x16xf32>
    %cst_15 = arith.constant dense<0.000000e+00> : vector<8x16xf32>
    %18 = tpu.matmul %9, %16, %cst_15 {dimension_numbers = #tpu.dot_dimension_numbers<[1], [0], [0], [1], [0, 0, 1, 1], [], []>} : vector<8x4xf32>, vector<4x16xf32>, vector<8x16xf32> -> vector<8x16xf32>
    %c0_16 = arith.constant 0 : index
    %c32 = arith.constant 32 : index
    %19 = vector.load %arg12[%c0_16, %c32] : memref<8x64xf32, #tpu.memory_space<vmem>>, vector<8x16xf32>
    tpu.vector_store %arg12[%c0_16, %c32], %18 {strides = array<i32>} : memref<8x64xf32, #tpu.memory_space<vmem>>, vector<8x16xf32>,
    %cst_17 = arith.constant dense<0.000000e+00> : vector<8x16xf32>
    %20 = tpu.matmul %9, %17, %cst_17 {dimension_numbers = #tpu.dot_dimension_numbers<[1], [0], [0], [1], [0, 0, 1, 1], [], []>} : vector<8x4xf32>, vector<4x16xf32>, vector<8x16xf32> -> vector<8x16xf32>
    %c0_18 = arith.constant 0 : index
    %c48 = arith.constant 48 : index
    %21 = vector.load %arg12[%c0_18, %c48] : memref<8x64xf32, #tpu.memory_space<vmem>>, vector<8x16xf32>
    tpu.vector_store %arg12[%c0_18, %c48], %20 {strides = array<i32>} : memref<8x64xf32, #tpu.memory_space<vmem>>, vector<8x16xf32>,
    %c0_19 = arith.constant 0 : index
    %c0_20 = arith.constant 0 : index
    %22 = vector.load %arg12[%c0_19, %c0_20] : memref<8x64xf32, #tpu.memory_space<vmem>>, vector<8x64xf32>
    %c0_21 = arith.constant 0 : index
    %c0_22 = arith.constant 0 : index
    %23 = vector.load %arg6[%c0_21, %c0_22] : memref<8x1xf32, #tpu.memory_space<vmem>>, vector<8x1xf32>
    %24 = vector.broadcast %23 : vector<8x1xf32> to vector<8x64xf32>
    %25 = arith.addf %22, %24 : vector<8x64xf32>
    %cst_23 = arith.constant dense<0.000000e+00> : vector<8xf32>
    %26 = vector.multi_reduction <add>, %25, %cst_23 [1] : vector<8x64xf32> to vector<8xf32>
    %27 = vector.shape_cast %26 : vector<8xf32> to vector<8x1xf32>
    %cst_24 = arith.constant 6.400000e+01 : f32
    %28 = vector.broadcast %cst_24 : f32 to vector<8x1xf32>
    %29 = arith.divf %27, %28 : vector<8x1xf32>
    %30 = vector.broadcast %29 : vector<8x1xf32> to vector<8x64xf32>
    %31 = arith.subf %25, %30 : vector<8x64xf32>
    %32 = arith.mulf %31, %31 : vector<8x64xf32>
    %cst_25 = arith.constant dense<0.000000e+00> : vector<8xf32>
    %33 = vector.multi_reduction <add>, %32, %cst_25 [1] : vector<8x64xf32> to vector<8xf32>
    %34 = vector.shape_cast %33 : vector<8xf32> to vector<8x1xf32>
    %cst_26 = arith.constant 6.400000e+01 : f32
    %35 = vector.broadcast %cst_26 : f32 to vector<8x1xf32>
    %36 = arith.divf %34, %35 : vector<8x1xf32>
    %37 = vector.broadcast %29 : vector<8x1xf32> to vector<8x64xf32>
    %38 = arith.subf %25, %37 : vector<8x64xf32>
    %cst_27 = arith.constant 9.99999974E-6 : f32
    %39 = vector.broadcast %cst_27 : f32 to vector<8x1xf32>
    %40 = arith.addf %36, %39 : vector<8x1xf32>
    %41 = math.rsqrt %40 : vector<8x1xf32>
    %42 = vector.broadcast %41 : vector<8x1xf32> to vector<8x64xf32>
    %43 = arith.mulf %38, %42 : vector<8x64xf32>
    %cst_28 = arith.constant 3.000000e+00 : f32
    %44 = vector.broadcast %cst_28 : f32 to vector<8x64xf32>
    %45 = arith.addf %43, %44 : vector<8x64xf32>
    %cst_29 = arith.constant 0.000000e+00 : f32
    %cst_30 = arith.constant 6.000000e+00 : f32
    %46 = vector.broadcast %cst_29 : f32 to vector<8x64xf32>
    %47 = arith.maximumf %46, %45 : vector<8x64xf32>
    %48 = vector.broadcast %cst_30 : f32 to vector<8x64xf32>
    %49 = arith.minimumf %48, %47 : vector<8x64xf32>
    %cst_31 = arith.constant 0.166666672 : f32
    %50 = vector.broadcast %cst_31 : f32 to vector<8x64xf32>
    %51 = arith.mulf %49, %50 : vector<8x64xf32>
    %52 = arith.mulf %43, %51 : vector<8x64xf32>
    %c0_32 = arith.constant 0 : index
    %c0_33 = arith.constant 0 : index
    %53 = vector.load %arg7[%c0_32, %c0_33] : memref<4x8xf32, #tpu.memory_space<vmem>>, vector<4x8xf32>
    %c0_34 = arith.constant 0 : index
    %c0_35 = arith.constant 0 : index
    %54 = vector.load %arg8[%c0_34, %c0_35] : memref<4x1xf32, #tpu.memory_space<vmem>>, vector<4x1xf32>
    %c0_36 = arith.constant 0 : index
    %c0_37 = arith.constant 0 : index
    %55 = vector.load %arg9[%c0_36, %c0_37] : memref<4x8xf32, #tpu.memory_space<vmem>>, vector<4x8xf32>
    %c0_38 = arith.constant 0 : index
    %c0_39 = arith.constant 0 : index
    %56 = vector.load %arg10[%c0_38, %c0_39] : memref<4x1xf32, #tpu.memory_space<vmem>>, vector<4x1xf32>
    %57 = vector.extract_strided_slice %52 {offsets = [0, 0], sizes = [8, 16], strides = [1, 1]} : vector<8x64xf32> to vector<8x16xf32>
    %58 = vector.extract_strided_slice %52 {offsets = [0, 16], sizes = [8, 16], strides = [1, 1]} : vector<8x64xf32> to vector<8x16xf32>
    %cst_40 = arith.constant dense<0.000000e+00> : vector<4x16xf32>
    %59 = tpu.matmul %53, %57, %cst_40 {dimension_numbers = #tpu.dot_dimension_numbers<[1], [0], [0], [1], [0, 0, 1, 1], [], []>} : vector<4x8xf32>, vector<8x16xf32>, vector<4x16xf32> -> vector<4x16xf32>
    %60 = vector.broadcast %54 : vector<4x1xf32> to vector<4x16xf32>
    %61 = arith.addf %59, %60 : vector<4x16xf32>
    %62 = arith.negf %61 : vector<4x16xf32>
    %63 = math.exp %62 : vector<4x16xf32>
    %cst_41 = arith.constant 1.000000e+00 : f32
    %64 = vector.broadcast %cst_41 : f32 to vector<4x16xf32>
    %65 = arith.addf %64, %63 : vector<4x16xf32>
    %66 = arith.divf %64, %65 : vector<4x16xf32>
    %c0_42 = arith.constant 0 : index
    %c0_43 = arith.constant 0 : index
    %67 = vector.load %arg13[%c0_42, %c0_43] : memref<8x16xf32, #tpu.memory_space<vmem>>, vector<4x16xf32>
    tpu.vector_store %arg13[%c0_42, %c0_43], %66 {strides = array<i32>} : memref<8x16xf32, #tpu.memory_space<vmem>>, vector<4x16xf32>,
    %cst_44 = arith.constant dense<0.000000e+00> : vector<4x16xf32>
    %68 = tpu.matmul %55, %58, %cst_44 {dimension_numbers = #tpu.dot_dimension_numbers<[1], [0], [0], [1], [0, 0, 1, 1], [], []>} : vector<4x8xf32>, vector<8x16xf32>, vector<4x16xf32> -> vector<4x16xf32>
    %69 = vector.broadcast %56 : vector<4x1xf32> to vector<4x16xf32>
    %70 = arith.addf %68, %69 : vector<4x16xf32>
    %71 = arith.negf %70 : vector<4x16xf32>
    %72 = math.exp %71 : vector<4x16xf32>
    %cst_45 = arith.constant 1.000000e+00 : f32
    %73 = vector.broadcast %cst_45 : f32 to vector<4x16xf32>
    %74 = arith.addf %73, %72 : vector<4x16xf32>
    %75 = arith.divf %73, %74 : vector<4x16xf32>
    %c0_46 = arith.constant 0 : index
    %c0_47 = arith.constant 0 : index
    %76 = vector.load %arg14[%c0_46, %c0_47] : memref<8x16xf32, #tpu.memory_space<vmem>>, vector<4x16xf32>
    tpu.vector_store %arg14[%c0_46, %c0_47], %75 {strides = array<i32>} : memref<8x16xf32, #tpu.memory_space<vmem>>, vector<4x16xf32>,
    %77 = vector.extract_strided_slice %52 {offsets = [0, 32], sizes = [8, 16], strides = [1, 1]} : vector<8x64xf32> to vector<8x16xf32>
    %78 = vector.extract_strided_slice %52 {offsets = [0, 48], sizes = [8, 16], strides = [1, 1]} : vector<8x64xf32> to vector<8x16xf32>
    %cst_48 = arith.constant dense<0.000000e+00> : vector<4x16xf32>
    %79 = tpu.matmul %53, %77, %cst_48 {dimension_numbers = #tpu.dot_dimension_numbers<[1], [0], [0], [1], [0, 0, 1, 1], [], []>} : vector<4x8xf32>, vector<8x16xf32>, vector<4x16xf32> -> vector<4x16xf32>
    %80 = vector.broadcast %54 : vector<4x1xf32> to vector<4x16xf32>
    %81 = arith.addf %79, %80 : vector<4x16xf32>
    %82 = arith.negf %81 : vector<4x16xf32>
    %83 = math.exp %82 : vector<4x16xf32>
    %cst_49 = arith.constant 1.000000e+00 : f32
    %84 = vector.broadcast %cst_49 : f32 to vector<4x16xf32>
    %85 = arith.addf %84, %83 : vector<4x16xf32>
    %86 = arith.divf %84, %85 : vector<4x16xf32>
    %c4 = arith.constant 4 : index
    %c0_50 = arith.constant 0 : index
    %87 = vector.load %arg13[%c4, %c0_50] : memref<8x16xf32, #tpu.memory_space<vmem>>, vector<4x16xf32>
    tpu.vector_store %arg13[%c4, %c0_50], %86 {strides = array<i32>} : memref<8x16xf32, #tpu.memory_space<vmem>>, vector<4x16xf32>,
    %cst_51 = arith.constant dense<0.000000e+00> : vector<4x16xf32>
    %88 = tpu.matmul %55, %78, %cst_51 {dimension_numbers = #tpu.dot_dimension_numbers<[1], [0], [0], [1], [0, 0, 1, 1], [], []>} : vector<4x8xf32>, vector<8x16xf32>, vector<4x16xf32> -> vector<4x16xf32>
    %89 = vector.broadcast %56 : vector<4x1xf32> to vector<4x16xf32>
    %90 = arith.addf %88, %89 : vector<4x16xf32>
    %91 = arith.negf %90 : vector<4x16xf32>
    %92 = math.exp %91 : vector<4x16xf32>
    %cst_52 = arith.constant 1.000000e+00 : f32
    %93 = vector.broadcast %cst_52 : f32 to vector<4x16xf32>
    %94 = arith.addf %93, %92 : vector<4x16xf32>
    %95 = arith.divf %93, %94 : vector<4x16xf32>
    %c4_53 = arith.constant 4 : index
    %c0_54 = arith.constant 0 : index
    %96 = vector.load %arg14[%c4_53, %c0_54] : memref<8x16xf32, #tpu.memory_space<vmem>>, vector<4x16xf32>
    tpu.vector_store %arg14[%c4_53, %c0_54], %95 {strides = array<i32>} : memref<8x16xf32, #tpu.memory_space<vmem>>, vector<4x16xf32>,
    %c0_55 = arith.constant 0 : index
    %c0_56 = arith.constant 0 : index
    %97 = vector.load %arg13[%c0_55, %c0_56] : memref<8x16xf32, #tpu.memory_space<vmem>>, vector<8x16xf32>
    %c0_57 = arith.constant 0 : index
    %c0_58 = arith.constant 0 : index
    %98 = vector.load %arg3[%c0_57, %c0_58] : memref<16x256xf32, #tpu.memory_space<vmem>>, vector<16x256xf32>
    %cst_59 = arith.constant dense<0.000000e+00> : vector<8x256xf32>
    %99 = tpu.matmul %97, %98, %cst_59 {dimension_numbers = #tpu.dot_dimension_numbers<[1], [0], [0], [1], [0, 0, 1, 1], [], []>} : vector<8x16xf32>, vector<16x256xf32>, vector<8x256xf32> -> vector<8x256xf32>
    %c0_60 = arith.constant 0 : index
    %c0_61 = arith.constant 0 : index
    %100 = vector.load %arg14[%c0_60, %c0_61] : memref<8x16xf32, #tpu.memory_space<vmem>>, vector<8x16xf32>
    %c0_62 = arith.constant 0 : index
    %c0_63 = arith.constant 0 : index
    %101 = vector.load %arg4[%c0_62, %c0_63] : memref<16x256xf32, #tpu.memory_space<vmem>>, vector<16x256xf32>
    %cst_64 = arith.constant dense<0.000000e+00> : vector<8x256xf32>
    %102 = tpu.matmul %100, %101, %cst_64 {dimension_numbers = #tpu.dot_dimension_numbers<[1], [0], [0], [1], [0, 0, 1, 1], [], []>} : vector<8x16xf32>, vector<16x256xf32>, vector<8x256xf32> -> vector<8x256xf32>
    %103 = arith.mulf %0, %99 : vector<8x256xf32>
    %104 = arith.mulf %103, %102 : vector<8x256xf32>
    %c0_65 = arith.constant 0 : index
    %c0_66 = arith.constant 0 : index
    %105 = vector.load %arg11[%c0_65, %c0_66] : memref<8x256xf32, #tpu.memory_space<vmem>>, vector<8x256xf32>
    tpu.vector_store %arg11[%c0_65, %c0_66], %104 {strides = array<i32>} : memref<8x256xf32, #tpu.memory_space<vmem>>, vector<8x256xf32>,
    return
  }
}

</mosaic_0001>

<bundles_post_ra>
// kernel: tpu_custom_call.1
= control target key start
LH: loop header
LB: loop body
LE: loop exit
PB: predicated region body
PF: predicated region fallthrough
CT: control target
= control target key end

     0   :  { %s1667_s0 = inlined_call_operand.vmem [shape: f32[8,256], index: 0, kind: input, shape index: {}]   ;;  %s1668_s1 = inlined_call_operand.vmem [shape: f32[256,16], index: 1, kind: input, shape index: {}]   ;;  %s1669_s2 = inlined_call_operand.vmem [shape: f32[256,16], index: 2, kind: input, shape index: {}]   ;;  %s1670_s3 = inlined_call_operand.vmem [shape: f32[16,256], index: 3, kind: input, shape index: {}]   ;;  %s1671_s4 = inlined_call_operand.vmem [shape: f32[16,256], index: 4, kind: input, shape index: {}]   ;;  %s1672_s5 = inlined_call_operand.vmem [shape: f32[8,4], index: 5, kind: input, shape index: {}]   ;;  %s1673_s6 = inlined_call_operand.vmem [shape: f32[8,1], index: 6, kind: input, shape index: {}]   ;;  %s1674_s7 = inlined_call_operand.vmem [shape: f32[4,8], index: 7, kind: input, shape index: {}]   ;;  %s1675_s8 = inlined_call_operand.vmem [shape: f32[4,1], index: 8, kind: input, shape index: {}]   ;;  %s1676_s9 = inlined_call_operand.vmem [shape: f32[4,8], index: 9, kind: input, shape index: {}]   ;;  %s1677_s10 = inlined_call_operand.vmem [shape: f32[4,1], index: 10, kind: input, shape index: {}]   ;;  %s1678_s11 = inlined_call_operand.hbm [shape: f32[8,256], index: 11, kind: output, shape index: {}]  }
   0x1   :  { %v72_v0 = vld [vmem:[%s1668_s1 + $0xf8] sm:$0xff]  ;;  %v71_v4 = vld [vmem:[%s1668_s1 + $0xf0] sm:$0xff]  ;;  %v70_v8 = vld [vmem:[%s1668_s1 + $0xe8] sm:$0xff] }
   0x2   :  { %v175_v1 = vld [vmem:[%s1669_s2 + $0xf8] sm:$0xff]  ;;  %1129 = vmatprep.subr.mxu0 %v72_v0  ;;  %v174_v5 = vld [vmem:[%s1669_s2 + $0xf0] sm:$0xff]  ;;  %v173_v9 = vld [vmem:[%s1669_s2 + $0xe8] sm:$0xff] }
   0x3   :  { %v56_v2 = vld [vmem:[%s1668_s1 + $0x78] sm:$0xff]  ;;  %1164 = vmatprep.subr.mxu1 %v175_v1  ;;  %v55_v6 = vld [vmem:[%s1668_s1 + $0x70] sm:$0xff]  ;;  %v54_v10 = vld [vmem:[%s1668_s1 + $0x68] sm:$0xff] }
   0x4   :  { %v159_v3 = vld [vmem:[%s1669_s2 + $0x78] sm:$0xff]  ;;  %1130 = vmatpush3.msra.mxu0 %v56_v2  ;;  %v158_v7 = vld [vmem:[%s1669_s2 + $0x70] sm:$0xff]  ;;  %v157_v11 = vld [vmem:[%s1669_s2 + $0x68] sm:$0xff] }
   0x5   :  { %1165 = vmatpush3.msra.mxu1 %v159_v3  ;;  %1131 = vmatprep.subr.mxu0 %v71_v4  ;;  %v69_v12 = vld [vmem:[%s1668_s1 + $0xe0] sm:$0xff]  ;;  %v68_v16 = vld [vmem:[%s1668_s1 + $0xd8] sm:$0xff]  ;;  %v67_v20 = vld [vmem:[%s1668_s1 + $0xd0] sm:$0xff] }
   0x6   :  { %1166 = vmatprep.subr.mxu1 %v174_v5  ;;  %1132 = vmatpush3.msra.mxu0 %v55_v6  ;;  %v172_v13 = vld [vmem:[%s1669_s2 + $0xe0] sm:$0xff]  ;;  %v171_v17 = vld [vmem:[%s1669_s2 + $0xd8] sm:$0xff]  ;;  %v170_v21 = vld [vmem:[%s1669_s2 + $0xd0] sm:$0xff] }
   0x7   :  { %1167 = vmatpush3.msra.mxu1 %v158_v7  ;;  %1133 = vmatprep.subr.mxu0 %v70_v8  ;;  %v53_v14 = vld [vmem:[%s1668_s1 + $0x60] sm:$0xff]  ;;  %v52_v18 = vld [vmem:[%s1668_s1 + $0x58] sm:$0xff]  ;;  %v51_v22 = vld [vmem:[%s1668_s1 + $0x50] sm:$0xff] }
   0x8   :  { %1168 = vmatprep.subr.mxu1 %v173_v9  ;;  %v156_v15 = vld [vmem:[%s1669_s2 + $0x60] sm:$0xff]  ;;  %1134 = vmatpush3.msra.mxu0 %v54_v10  ;;  %v155_v19 = vld [vmem:[%s1669_s2 + $0x58] sm:$0xff]  ;;  %v154_v23 = vld [vmem:[%s1669_s2 + $0x50] sm:$0xff] }
   0x9   :  { %1169 = vmatpush3.msra.mxu1 %v157_v11  ;;  %1135 = vmatprep.subr.mxu0 %v69_v12  ;;  %v66_v24 = vld [vmem:[%s1668_s1 + $0xc8] sm:$0xff]  ;;  %v65_v28 = vld [vmem:[%s1668_s1 + $0xc0] sm:$0xff]  ;;  %v64_v32 = vld [vmem:[%s1668_s1 + $0xb8] sm:$0xff] }
   0xa   :  { %1170 = vmatprep.subr.mxu1 %v172_v13  ;;  %1136 = vmatpush3.msra.mxu0 %v53_v14  ;;  %v169_v25 = vld [vmem:[%s1669_s2 + $0xc8] sm:$0xff]  ;;  %v168_v29 = vld [vmem:[%s1669_s2 + $0xc0] sm:$0xff]  ;;  %v167_v33 = vld [vmem:[%s1669_s2 + $0xb8] sm:$0xff] }
   0xb   :  { %1171 = vmatpush3.msra.mxu1 %v156_v15  ;;  %1137 = vmatprep.subr.mxu0 %v68_v16  ;;  %v50_v26 = vld [vmem:[%s1668_s1 + $0x48] sm:$0xff]  ;;  %v49_v30 = vld [vmem:[%s1668_s1 + $0x40] sm:$0xff]  ;;  %v48_v34 = vld [vmem:[%s1668_s1 + $0x38] sm:$0xff] }
   0xc   :  { %1172 = vmatprep.subr.mxu1 %v171_v17  ;;  %1138 = vmatpush3.msra.mxu0 %v52_v18  ;;  %v153_v27 = vld [vmem:[%s1669_s2 + $0x48] sm:$0xff]  ;;  %v152_v31 = vld [vmem:[%s1669_s2 + $0x40] sm:$0xff]  ;;  %v151_v35 = vld [vmem:[%s1669_s2 + $0x38] sm:$0xff] }
   0xd   :  { %1173 = vmatpush3.msra.mxu1 %v155_v19  ;;  %1139 = vmatprep.subr.mxu0 %v67_v20  ;;  %v63_v36 = vld [vmem:[%s1668_s1 + $0xb0] sm:$0xff]  ;;  %v62_v40 = vld [vmem:[%s1668_s1 + $0xa8] sm:$0xff]  ;;  %v61_v44 = vld [vmem:[%s1668_s1 + $0xa0] sm:$0xff] }
   0xe   :  { %1174 = vmatprep.subr.mxu1 %v170_v21  ;;  %1140 = vmatpush3.msra.mxu0 %v51_v22  ;;  %v166_v37 = vld [vmem:[%s1669_s2 + $0xb0] sm:$0xff]  ;;  %v165_v41 = vld [vmem:[%s1669_s2 + $0xa8] sm:$0xff]  ;;  %v164_v45 = vld [vmem:[%s1669_s2 + $0xa0] sm:$0xff] }
   0xf   :  { %1175 = vmatpush3.msra.mxu1 %v154_v23  ;;  %1141 = vmatprep.subr.mxu0 %v66_v24  ;;  %v47_v38 = vld [vmem:[%s1668_s1 + $0x30] sm:$0xff]  ;;  %v46_v42 = vld [vmem:[%s1668_s1 + $0x28] sm:$0xff]  ;;  %v45_v46 = vld [vmem:[%s1668_s1 + $0x20] sm:$0xff] }
  0x10   :  { %1176 = vmatprep.subr.mxu1 %v169_v25  ;;  %1142 = vmatpush3.msra.mxu0 %v50_v26  ;;  %v150_v39 = vld [vmem:[%s1669_s2 + $0x30] sm:$0xff]  ;;  %v149_v43 = vld [vmem:[%s1669_s2 + $0x28] sm:$0xff]  ;;  %v148_v47 = vld [vmem:[%s1669_s2 + $0x20] sm:$0xff] }
  0x11   :  { %1177 = vmatpush3.msra.mxu1 %v153_v27  ;;  %1143 = vmatprep.subr.mxu0 %v65_v28  ;;  %v60_v48 = vld [vmem:[%s1668_s1 + $0x98] sm:$0xff] }
  0x12   :  { %1178 = vmatprep.subr.mxu1 %v168_v29  ;;  %1144 = vmatpush3.msra.mxu0 %v49_v30  ;;  %v163_v49 = vld [vmem:[%s1669_s2 + $0x98] sm:$0xff] }
  0x13   :  { %1179 = vmatpush3.msra.mxu1 %v152_v31  ;;  %1145 = vmatprep.subr.mxu0 %v64_v32 }
  0x14   :  { %1180 = vmatprep.subr.mxu1 %v167_v33  ;;  %1146 = vmatpush3.msra.mxu0 %v48_v34 }
  0x15   :  { %1181 = vmatpush3.msra.mxu1 %v151_v35  ;;  %1147 = vmatprep.subr.mxu0 %v63_v36 }
  0x16   :  { %1182 = vmatprep.subr.mxu1 %v166_v37  ;;  %1148 = vmatpush3.msra.mxu0 %v47_v38 }
  0x17   :  { %1183 = vmatpush3.msra.mxu1 %v150_v39  ;;  %1149 = vmatprep.subr.mxu0 %v62_v40 }
  0x18   :  { %1184 = vmatprep.subr.mxu1 %v165_v41  ;;  %1150 = vmatpush3.msra.mxu0 %v46_v42 }
  0x19   :  { %1185 = vmatpush3.msra.mxu1 %v149_v43 }
  0x1a   :  { %16 = vsyncpa [#allocation6], 0  ;;  %1151 = vmatprep.subr.mxu0 %v61_v44  ;;  %1186 = vmatprep.subr.mxu1 %v164_v45  ;;  %v44_v50 = vld [vmem:[%s1668_s1 + $0x18] sm:$0xff]  ;;  %v59_v52 = vld [vmem:[%s1668_s1 + $0x90] sm:$0xff]  ;;  %v1307_v2 = vmov 0.0   ;;  %vm1308_vm0 = vmmov 0  }
  0x1b   :  { %v147_v51 = vld [vmem:[%s1669_s2 + $0x18] sm:$0xff]  ;;  %1152 = vmatpush3.msra.mxu0 %v45_v46  ;;  %1187 = vmatpush3.msra.mxu1 %v148_v47  ;;  %v162_v53 = vld [vmem:[%s1669_s2 + $0x90] sm:$0xff]  ;;  %v58_v56 = vld [vmem:[%s1668_s1 + $0x88] sm:$0xff]  ;;  %vm252_vm1 = vcmask 1043456   ;;  %vm248_vm2 = vcmask 31744   ;;  %v1309_v14 = vmov 0  }
  0x1c   :  { %1153 = vmatprep.subr.mxu0 %v60_v48  ;;  %1188 = vmatprep.subr.mxu1 %v163_v49  ;;  %v43_v54 = vld [vmem:[%s1668_s1 + $0x10] sm:$0xff]  ;;  %v161_v57 = vld [vmem:[%s1669_s2 + $0x88] sm:$0xff]  ;;  %v57_v60 = vld [vmem:[%s1668_s1 + $0x80] sm:$0xff]  ;;  %vm326_vm3 = vcmask 130048   ;;  %s1312_s16 = smov 32   ;;  %vm405_vm4 = vcmask 261248  }
  0x1d   :  { %v146_v55 = vld [vmem:[%s1669_s2 + $0x10] sm:$0xff]  ;;  %1154 = vmatpush3.msra.mxu0 %v44_v50  ;;  %1189 = vmatpush3.msra.mxu1 %v147_v51  ;;  %v42_v58 = vld [vmem:[%s1668_s1 + $0x8] sm:$0xff]  ;;  %v160_v61 = vld [vmem:[%s1669_s2 + $0x80] sm:$0xff]  ;;  %vm484_vm5 = vcmask 392448   ;;  %vm563_vm6 = vcmask 523648   ;;  %vm573_vm7 = vcmask 523264  }
  0x1e   :  { %1155 = vmatprep.subr.mxu0 %v59_v52  ;;  %1190 = vmatprep.subr.mxu1 %v162_v53  ;;  %v145_v59 = vld [vmem:[%s1669_s2 + $0x8] sm:$0xff]  ;;  %v41_v62 = vld [vmem:[%s1668_s1] sm:$0xff]  ;;  %vm602_vm8 = vcmask 64512   ;;  %s1313_s20 = smov 96   ;;  %s1314_s21 = smov 112   ;;  %vm682_vm9 = vcmask 125952  }
  0x1f   :  { %1156 = vmatpush3.msra.mxu0 %v43_v54  ;;  %1191 = vmatpush3.msra.mxu1 %v146_v55  ;;  %v1569_v63 = vld [vmem:[%s1667_s0 + $0x8] sm:$0xff]  ;;  %v144_v0 = vld [vmem:[%s1669_s2] sm:$0xff]  ;;  %s1310_s2 = smov 16   ;;  %s1315_s24 = smov 80  }
  0x20   :  { %1157 = vmatprep.subr.mxu0 %v58_v56  ;;  %1192 = vmatprep.subr.mxu1 %v161_v57  ;;  %v1577_v1 = vld [vmem:[%s1667_s0] sm:$0xff] }
  0x21   :  { %1158 = vmatpush3.msra.mxu0 %v42_v58  ;;  %1193 = vmatpush3.msra.mxu1 %v145_v59  ;;  %v247_v11 = vld [vmem:[%s1672_s5] sm:$0xff]  ;;  %s1311_s5 = smov 48  }
  0x22   :  { %1159 = vmatprep.subr.mxu0 %v57_v60  ;;  %1194 = vmatprep.subr.mxu1 %v160_v61  ;;  %v566_v23 = vld [vmem:[%s1673_s6] sm:$0xff]  ;;  %v937_v60 = vld [vmem:[%s1670_s3 + $0x18] sm:$0xff]  ;;  %v936_v61 = vld [vmem:[%s1670_s3 + $0x10] sm:$0xff] }
  0x23   :  { %1160 = vmatpush3.msra.mxu0 %v41_v62  ;;  %137 = vmatprep.mubr.f32.mxu0 %v1569_v63  ;;  %v593_v46 = vld [vmem:[%s1674_s7] sm:$0xf]  ;;  %v935_v62 = vld [vmem:[%s1670_s3 + $0x8] sm:$0xff] }
  0x24   :  { %1195 = vmatpush3.msra.mxu1 %v144_v0  ;;  %240 = vmatprep.mubr.f32.mxu1 %v1569_v63  ;;  %v594_v47 = vld [vmem:[%s1675_s8] sm:$0xf] }
  0x25   :  { %138 = vmatmul.mubr.f32.vlgmr.msra.gmra.mxu0 %v1577_v1  ;;  %241 = vmatmul.mubr.f32.vlgmr.msra.gmra.mxu1 %v1577_v1  ;;  %v596_v48 = vld [vmem:[%s1677_s10] sm:$0xf] }
  0x26   :  { %1215 = vmatprep.subr.mxu0 %v1307_v2  ;;  %1220 = vmatprep.subr.mxu1 %v1307_v2  ;;  %v595_v49 = vld [vmem:[%s1676_s9] sm:$0xf] }
  0x27   :  { %1217 = vmatprep.mubr.msk.f32.mxu0 %vm1308_vm0, %v1307_v2  ;;  %1222 = vmatprep.mubr.msk.f32.mxu1 %vm1308_vm0, %v1307_v2  ;;  %v934_v0 = vld [vmem:[%s1670_s3] sm:$0xff]  ;;  %s1316_s3 = smov [#allocation5]  }
  0x28   :  { %1265 = vset.pattern.permute.xlu1 %v1309_v14  ;;  %1266 = vset.pattern.permute.xlu0 %v1309_v14 }
  0xe5   :  { %v1161_v3 = vpop.f32.mrf.mxu0  ;;  %v1196_v4 = vpop.f32.mrf.mxu1 }
  0xe7   :  { %v1162_v5 = vpop.f32.mrf.mxu0  ;;  %v1197_v6 = vpop.f32.mrf.mxu1 }
  0xe8   :  { %v1163_v7 = vadd.f32 %v1162_v5, %v1161_v3  ;;  %v1198_v8 = vadd.f32 %v1197_v6, %v1196_v4  ;;  %v1015_v3 = vld [vmem:[%s1671_s4 + $0x10] sm:$0xff]  ;;  %v1014_v4 = vld [vmem:[%s1671_s4 + $0x8] sm:$0xff]  ;;  %v1013_v5 = vld [vmem:[%s1671_s4] sm:$0xff] }
  0xea   :  { %v143_v9 = vmul.f32 0.0625, %v1163_v7  ;;  %v246_v10 = vmul.f32 0.0625, %v1198_v8 }
  0xec   :  { %v407_v12 = vrot.slane %v143_v9, 4  ;;  %v486_v13 = vrot.slane %v246_v10, 4  ;;  %1216 = vmatpush3.msk.msra.mxu0 %vm252_vm1, %v143_v9  ;;  %1221 = vmatpush3.msk.msra.mxu1 %vm252_vm1, %v246_v10 }
  0xed   :  { %1218 = vmatmul.mubr.msk.f32.vlgmr.msra.gmra.mxu0 %vm248_vm2, %v247_v11  ;;  %1223 = vmatmul.mubr.msk.f32.vlgmr.msra.gmra.mxu1 %vm248_vm2, %v247_v11 }
  0xee   :  { %1230 = vmatprep.subr.mxu1 %v1307_v2  ;;  %1225 = vmatprep.subr.mxu0 %v1307_v2 }
  0xef   :  { %1231 = vmatpush3.msk.msra.mxu1 %vm252_vm1, %v486_v13  ;;  %1226 = vmatpush3.msk.msra.mxu0 %vm252_vm1, %v407_v12 }
  0xf0   :  { %1227 = vmatprep.mubr.msk.f32.mxu0 %vm1308_vm0, %v1307_v2  ;;  %1232 = vmatprep.mubr.msk.f32.mxu1 %vm1308_vm0, %v1307_v2 }
  0xf1   :  { %1228 = vmatmul.mubr.msk.f32.vlgmr.msra.gmra.mxu0 %vm248_vm2, %v247_v11  ;;  %1233 = vmatmul.mubr.msk.f32.vlgmr.msra.gmra.mxu1 %vm248_vm2, %v247_v11 }
  0xf2   :  { %1235 = vmatprep.subr.mxu0 %v1307_v2  ;;  %1237 = vmatprep.mubr.msk.f32.mxu0 %vm1308_vm0, %v1307_v2 }
  0xf3   :  { %1240 = vmatprep.subr.mxu1 %v1307_v2  ;;  %1242 = vmatprep.mubr.msk.f32.mxu1 %vm1308_vm0, %v1307_v2 }
 0x1ad   :  { %v322_v15 = vpop.f32.mrf.mxu0  ;;  %v397_v16 = vpop.f32.mrf.mxu1 }
 0x1ae   :  { %327 = vst.msk [vmem:[#allocation2] sm:$0xff] %vm326_vm3, %v322_v15  ;;  %402 = vrot.lane.b32.xlu0 %v397_v16, %s1310_s2 }
 0x1af   :  { %v1219_v17 = vpop.f32.mrf.mxu0  ;;  %v1224_v18 = vpop.f32.mrf.mxu1 }
 0x1b1   :  { %v476_v19 = vpop.f32.mrf.mxu0  ;;  %v555_v20 = vpop.f32.mrf.mxu1 }
 0x1b2   :  { %560 = vrot.lane.b32.xlu1 %v555_v20, %s1311_s5  ;;  %481 = vrot.lane.b32.xlu0 %v476_v19, %s1312_s16 }
 0x1b3   :  { %v1234_v21 = vpop.f32.mrf.mxu1  ;;  %v1229_v22 = vpop.f32.mrf.mxu0 }
 0x1b6   :  { %569 = vperm.xlu1 %1265, %v566_v23  }
 0x220   :  { %v403_v24 = vpop.permute.xlu0 %402 }
 0x221   :  { %406 = vst.msk [vmem:[#allocation2] sm:$0xff] %vm405_vm4, %v403_v24 }
 0x224   :  { %v561_v25 = vpop.permute.xlu1 %560  ;;  %v482_v26 = vpop.permute.xlu0 %481 }
 0x225   :  { %485 = vst.msk [vmem:[#allocation2] sm:$0xff] %vm484_vm5, %v482_v26 }
 0x226   :  { %564 = vst.msk [vmem:[#allocation2] sm:$0xff] %vm563_vm6, %v561_v25 }
 0x22d   :  { %v565_v28 = vld [vmem:[#allocation2] sm:$0xff] }
 0x231   :  { %v570_v27 = vpop.permute.xlu1 %569 }
 0x232   :  { %v572_v29 = vadd.f32 %v570_v27, %v565_v28 }
 0x234   :  { %v574_v30 = vsel %vm573_vm7, %v572_v29, 0.0 }
 0x235   :  { %575 = vadd.xlane.f32.xlu0 %v574_v30 }
 0x2be   :  { %v576_v31 = vpop.xlane.xlu0 %575 }
 0x2bf   :  { %v578_v32 = vmul.f32 0.015625, %v576_v31 }
 0x2c1   :  { %v579_v33 = vsub.f32 %v572_v29, %v578_v32 }
 0x2c3   :  { %v580_v34 = vmul.f32 %v579_v33, %v579_v33 }
 0x2c5   :  { %v581_v35 = vsel %vm573_vm7, %v580_v34, 0.0 }
 0x2c6   :  { %582 = vadd.xlane.f32.xlu1 %v581_v35 }
 0x34f   :  { %v583_v36 = vpop.xlane.xlu1 %582 }
 0x350   :  { %v584_v37 = vmul.f32 0.015625, %v583_v36 }
 0x352   :  { %v585_v38 = vadd.f32 1e-05, %v584_v37 }
 0x354   :  { %1267 = vrsqrt.f32 %v585_v38 }
 0x361   :  { %v1268_v39 = vpop.eup %1267 }
 0x362   :  { %v587_v40 = vmul.f32 %v1268_v39, %v579_v33 }
 0x364   :  { %v588_v41 = vadd.f32 3.0, %v587_v40 }
 0x366   :  { %v589_v42 = vmax.f32 %v588_v41, 0.0 }
 0x368   :  { %v590_v43 = vmin.f32 %v589_v42, 6.0 }
 0x36a   :  { %v591_v44 = vmul.f32 0.16666667, %v590_v43 }
 0x36c   :  { %v592_v45 = vmul.f32 %v591_v44, %v587_v40 }
 0x36e   :  { %773 = vrot.lane.b32.xlu1 %v592_v45, %s1313_s20  ;;  %690 = vrot.lane.b32.xlu0 %v592_v45, %s1314_s21 }
 0x36f   :  { %1236 = vmatpush3.msra.mxu0 %v592_v45 }
 0x370   :  { %1238 = vmatmul.mubr.msk.f32.vlgmr.msra.gmra.mxu0 %vm602_vm8, %v593_v46  ;;  %1245 = vmatprep.subr.mxu0 %v1307_v2 }
 0x371   :  { %1247 = vmatprep.mubr.msk.f32.mxu0 %vm1308_vm0, %v1307_v2 }
 0x372   :  { %599 = vperm.xlu1 %1265, %v594_v47   ;;  %853 = vrot.lane.b32.xlu0 %v592_v45, %s1315_s24 }
 0x376   :  { %686 = vperm.xlu0 %1266, %v596_v48  }
 0x3e0   :  { %v774_v50 = vpop.permute.xlu1 %773  ;;  %v691_v51 = vpop.permute.xlu0 %690 }
 0x3e1   :  { %1241 = vmatpush3.msra.mxu1 %v691_v51  ;;  %1246 = vmatpush3.msra.mxu0 %v774_v50 }
 0x3e2   :  { %1243 = vmatmul.mubr.msk.f32.vlgmr.msra.gmra.mxu1 %vm602_vm8, %v595_v49  ;;  %1248 = vmatmul.mubr.msk.f32.vlgmr.msra.gmra.mxu0 %vm602_vm8, %v593_v46 }
 0x3e3   :  { %1250 = vmatprep.subr.mxu1 %v1307_v2  ;;  %1252 = vmatprep.mubr.msk.f32.mxu1 %vm1308_vm0, %v1307_v2 }
 0x3e4   :  { %v854_v52 = vpop.permute.xlu0 %853  ;;  %1005 = vmatprep.mubr.f32.mxu0 %v1307_v2  ;;  %969 = vmatprep.subr.mxu0 %v937_v60 }
 0x3e5   :  { %1251 = vmatpush3.msra.mxu1 %v854_v52  ;;  %970 = vmatpush1.msra.mxu0 %v936_v61 }
 0x3e6   :  { %1253 = vmatmul.mubr.msk.f32.vlgmr.msra.gmra.mxu1 %vm602_vm8, %v595_v49  ;;  %971 = vmatprep.subr.mxu0 %v935_v62 }
 0x3e7   :  { %1084 = vmatprep.mubr.f32.mxu1 %v1307_v2  ;;  %972 = vmatpush1.msra.mxu0 %v934_v0  ;;  %v1016_v2 = vld [vmem:[%s1671_s4 + $0x18] sm:$0xff]  ;;  %s1103_s4 = sshll.u32 %s1316_s3, 4  ;;  %s1104_s4 = int_to_ptr.vmem [resolvable:$true] %s1103_s4 }
 0x3e8   :  { %1048 = vmatprep.subr.mxu1 %v1016_v2  ;;  %s1285_s18 = scalar_lea.vmem %s1104_s4, 256  ;;  %p1290_p1 = scmp.lt.s32.totalorder %s1104_s4, %s1104_s4 }
 0x3e9   :  { %1049 = vmatpush1.msra.mxu1 %v1015_v3  ;;  %p1286_p0 = scmp.ne.s32.totalorder %s1104_s4, %s1285_s18  ;;  %p1291_p2 = scmp.lt.s32.totalorder %s1285_s18, %s1285_s18 }
 0x3ea   :  { %1050 = vmatprep.subr.mxu1 %v1014_v4 }
 0x3eb   :  { %1051 = vmatpush1.msra.mxu1 %v1013_v5  ;;  %p1292_p3 = por %p1291_p2, %p1290_p1 }
 0x3ed   :  { %v600_v53 = vpop.permute.xlu1 %599  ;;  %p1293_p4 = pnand %p1292_p3, %p1286_p0 }
 0x3f1   :  { %v687_v7 = vpop.permute.xlu0 %686 }
 0x430   :  { %v672_v54 = vpop.f32.mrf.mxu0 }
 0x431   :  { %v673_v55 = vadd.f32 %v672_v54, %v600_v53 }
 0x432   :  { %v1239_v56 = vpop.f32.mrf.mxu0 }
 0x433   :  { %v1120_v57 = vmul.f32 -1.442695, %v673_v55 }
 0x435   :  { %1269 = vpow2.f32 %v1120_v57 }
 0x442   :  { %v1270_v58 = vpop.eup %1269 }
 0x443   :  { %v679_v59 = vadd.f32 1.0, %v1270_v58 }
 0x445   :  { %1271 = vrcp.f32 %v679_v59 }
 0x452   :  { %v1272_v6 = vpop.eup %1271 }
 0x453   :  { %683 = vst.msk [vmem:[#allocation3] sm:$0xf] %vm682_vm9, %v1272_v6 }
 0x4a2   :  { %v762_v8 = vpop.f32.mrf.mxu1  ;;  %v842_v9 = vpop.f32.mrf.mxu0 }
 0x4a3   :  { %v843_v10 = vadd.f32 %v842_v9, %v600_v53  ;;  %v763_v11 = vadd.f32 %v762_v8, %v687_v7 }
 0x4a4   :  { %v1244_v12 = vpop.f32.mrf.mxu1  ;;  %v1249_v13 = vpop.f32.mrf.mxu0 }
 0x4a5   :  { %v1124_v14 = vmul.f32 -1.442695, %v843_v10  ;;  %v1122_v15 = vmul.f32 -1.442695, %v763_v11 }
 0x4a6   :  { %v922_v16 = vpop.f32.mrf.mxu1 }
 0x4a7   :  { %1273 = vpow2.f32 %v1124_v14  ;;  %v923_v17 = vadd.f32 %v922_v16, %v687_v7 }
 0x4a8   :  { %1275 = vpow2.f32 %v1122_v15  ;;  %v1254_v18 = vpop.f32.mrf.mxu1 }
 0x4a9   :  { %v1126_v19 = vmul.f32 -1.442695, %v923_v17 }
 0x4ab   :  { %1277 = vpow2.f32 %v1126_v19 }
 0x4b4   :  { %v1274_v20 = vpop.eup %1273 }
 0x4b5   :  { %v1276_v21 = vpop.eup %1275  ;;  %v849_v22 = vadd.f32 1.0, %v1274_v20 }
 0x4b6   :  { %v769_v23 = vadd.f32 1.0, %v1276_v21 }
 0x4b7   :  { %1279 = vrcp.f32 %v849_v22 }
 0x4b8   :  { %v1278_v24 = vpop.eup %1277  ;;  %1281 = vrcp.f32 %v769_v23 }
 0x4b9   :  { %v929_v25 = vadd.f32 1.0, %v1278_v24 }
 0x4bb   :  { %1283 = vrcp.f32 %v929_v25 }
 0x4c4   :  { %v1280_v26 = vpop.eup %1279 }
 0x4c5   :  { %v1282_v27 = vpop.eup %1281  ;;  %852 = vst.msk [vmem:[#allocation3 + $0x4] sm:$0xf] %vm682_vm9, %v1280_v26 }
 0x4c6   :  { %772 = vst.msk [vmem:[#allocation4] sm:$0xf] %vm682_vm9, %v1282_v27 }
 0x4c8   :  { %v1284_v28 = vpop.eup %1283 }
 0x4c9   :  { %932 = vst.msk [vmem:[#allocation4 + $0x4] sm:$0xf] %vm682_vm9, %v1284_v28 }
 0x4cc   :  { %v933_v29 = vld [vmem:[#allocation3] sm:$0xff] }
 0x4cd   :  { %1127 = vmatmul.mubr.msk.f32.vlgmr.msra.gmra.mxu0 %vm326_vm3, %v933_v29 }
 0x4d0   :  { %v1012_v30 = vld [vmem:[#allocation4] sm:$0xff] }
 0x4d1   :  { %1128 = vmatmul.mubr.msk.f32.vlgmr.msra.gmra.mxu1 %vm326_vm3, %v1012_v30 }
 0x58d   :  { %v1007_v31 = vpop.f32.mrf.mxu0 }
 0x58e   :  { %v1091_v33 = vmul.f32 %v1007_v31, %v1577_v1 }
 0x58f   :  { %v1009_v32 = vpop.f32.mrf.mxu0 }
 0x590   :  { %v1092_v35 = vmul.f32 %v1009_v32, %v1569_v63 }
 0x591   :  { %v1086_v34 = vpop.f32.mrf.mxu1 }
 0x592   :  { %v1093_v36 = vmul.f32 %v1091_v33, %v1086_v34 }
 0x593   :  { %v1088_v37 = vpop.f32.mrf.mxu1 }
 0x594   :  { %1095 = vst [vmem:[#allocation5] sm:$0xff] %v1093_v36  ;;  %v1094_v38 = vmul.f32 %v1092_v35, %v1088_v37 }
 0x596   :  { %1096 = vst [vmem:[#allocation5 + $0x8] sm:$0xff] %v1094_v38 }
 0x597   :  { %1296 = shalt.err (!%p1293_p4)
}
 0x598   :  { %1106 = dma.vmem_to_hbm [thread:$0]  %s1104_s4, 256, %s1678_s11, [#allocation6]  }
 0x599   :  { %1305 = dma.done.wait [#allocation6], 256  }
 0x59a   :  { %1306 = vsyncadd [#allocation6], 4294967040 }
 0x59b   :  { %1110 = vsyncpa [#allocation6], 1 }

</bundles_post_ra>
